<compile_context>
chip_gen: v7x
topology: tpu7x:2x2x1
jax: 0.10.0
libtpu: 0.0.40
codegen_flags: <defaults>
</compile_context>

<pallas_src>
import functools

import jax
import jax.numpy as jnp
from jax import lax
from jax.experimental import pallas as pl
from jax.experimental.pallas import tpu as pltpu


def _round_up(x, m):
    return ((x + m - 1) // m) * m


def _gated_conv1d_kernel(x_ref, w_ref, b_ref, o_ref, xbuf_ref, *,
                         K, dilation, TT, halo, halo_r, c_out_pad):
    # x_ref : (1, TT, C_in_p)            current time tile (VMEM, pipelined)
    # w_ref : (K, C_in_p, 2*C_out_p)     fused [filter | gate] weights
    # b_ref : (1, 2*C_out_p)             fused bias
    # o_ref : (1, TT, C_out_p)           output tile
    # xbuf  : (halo_r + TT, C_in_p)      scratch: carried halo + staged tile
    j = pl.program_id(1)

    if halo > 0:
        # Causal zero history at the start of each sequence.
        @pl.when(j == 0)
        def _():
            xbuf_ref[pl.ds(0, halo_r), :] = jnp.zeros(
                (halo_r, xbuf_ref.shape[1]), xbuf_ref.dtype)

        # Stage the current tile after the carried halo (sublane-aligned copy).
        xbuf_ref[pl.ds(halo_r, TT), :] = x_ref[0]

        off0 = halo_r - halo

        def window(k):
            return xbuf_ref[pl.ds(off0 + k * dilation, TT), :]
    else:
        def window(k):
            return x_ref[0]

    # Unrolled taps: one fused (filter|gate) MXU matmul per tap.
    acc = jnp.dot(window(0), w_ref[0], preferred_element_type=jnp.float32)
    for k in range(1, K):
        acc = acc + jnp.dot(window(k), w_ref[k],
                            preferred_element_type=jnp.float32)

    # Epilogue: bias + gated activation, lane-aligned f/g split.
    acc = acc + b_ref[...].astype(jnp.float32)
    f = acc[:, :c_out_pad]
    g = acc[:, c_out_pad:]
    o_ref[0] = (f * jax.nn.sigmoid(g)).astype(o_ref.dtype)

    if halo > 0:
        # Carry the tail of this tile as the next tile's causal history.
        @pl.when(j + 1 < pl.num_programs(1))
        def _():
            xbuf_ref[pl.ds(0, halo_r), :] = xbuf_ref[pl.ds(TT, halo_r), :]


def gated_conv1d(x, w_f, b_f, w_g, b_g, *, kernel_size, dilation=1,
                 stride=1, padding=0, groups=1, time_tile=512):
    """Pallas implementation of GatedConv1d.forward.

    x   : (N, C_in, T)        -- PyTorch NCL layout
    w_* : (C_out, C_in, K)    -- PyTorch Conv1d weight layout
    b_* : (C_out,)
    """
    assert stride == 1 and padding == 0 and groups == 1

    N, C_in, T = x.shape
    C_out = w_f.shape[0]
    K = kernel_size
    halo = (K - 1) * dilation                      # causal left context
    halo_r = _round_up(halo, 8) if halo > 0 else 0 # sublane-aligned carry

    LANE = 128
    C_in_p = _round_up(C_in, LANE)
    C_out_p = _round_up(C_out, LANE)               # lane-dense output stores

    # Time tile: multiple of 8, >= carried halo, bounded by (rounded) T.
    TT = max(max(halo_r, 8), min(time_tile, _round_up(T, 8)))
    TT = _round_up(TT, 8)
    n_tiles = pl.cdiv(T, TT)
    T_p = n_tiles * TT

    # NCL -> channels-last, pad channels to lane multiple and T to tile multiple
    # (single fused transpose+pad pass; no causal pad in HBM — handled in-kernel).
    # TODO(synk): a channels-last model interface would remove these transposes.
    x_cl = jnp.transpose(x, (0, 2, 1))
    x_cl = jnp.pad(x_cl, ((0, 0), (0, T_p - T), (0, C_in_p - C_in)))

    def prep_w(w):
        w = jnp.transpose(w, (2, 1, 0))            # (K, C_in, C_out)
        return jnp.pad(w, ((0, 0), (0, C_in_p - C_in), (0, C_out_p - C_out)))

    w_fused = jnp.concatenate([prep_w(w_f), prep_w(w_g)], axis=-1)
    b_fused = jnp.concatenate([
        jnp.pad(b_f.astype(jnp.float32), (0, C_out_p - C_out)),
        jnp.pad(b_g.astype(jnp.float32), (0, C_out_p - C_out)),
    ]).reshape(1, 2 * C_out_p)

    kernel = functools.partial(
        _gated_conv1d_kernel, K=K, dilation=dilation, TT=TT,
        halo=halo, halo_r=halo_r, c_out_pad=C_out_p)

    out_cl = pl.pallas_call(
        kernel,
        out_shape=jax.ShapeDtypeStruct((N, T_p, C_out_p), x.dtype),
        grid_spec=pltpu.PrefetchScalarGridSpec(
            num_scalar_prefetch=0,
            grid=(N, n_tiles),
            in_specs=[
                # TODO(synk): on v5e consider pipeline_mode=pl.Buffered(3) here
                # if the profile shows the x DMA exposed.
                pl.BlockSpec((1, TT, C_in_p), lambda n, j: (n, j, 0)),
                pl.BlockSpec((K, C_in_p, 2 * C_out_p), lambda n, j: (0, 0, 0)),
                pl.BlockSpec((1, 2 * C_out_p), lambda n, j: (0, 0)),
            ],
            out_specs=pl.BlockSpec((1, TT, C_out_p), lambda n, j: (n, j, 0)),
            scratch_shapes=[pltpu.VMEM((halo_r + TT, C_in_p), x.dtype)],
        ),
        compiler_params=pltpu.CompilerParams(
            dimension_semantics=("parallel", "arbitrary")),
    )(x_cl, w_fused, b_fused)

    # Slice off channel/time padding, back to PyTorch NCL layout.
    return jnp.transpose(out_cl[:, :T, :C_out], (0, 2, 1))


def _reference(x, w_f, b_f, w_g, b_g, *, kernel_size, dilation):
    """Pure-JAX reference mirroring the PyTorch forward."""
    pad_left = (kernel_size - 1) * dilation
    x_pad = jnp.pad(x, ((0, 0), (0, 0), (pad_left, 0)))
    dn = lax.conv_dimension_numbers(x_pad.shape, w_f.shape, ("NCH", "OIH", "NCH"))
    conv = functools.partial(lax.conv_general_dilated,
                             window_strides=(1,), padding=((0, 0),),
                             rhs_dilation=(dilation,), dimension_numbers=dn)
    a = conv(x_pad, w_f) + b_f[None, :, None]
    g = conv(x_pad, w_g) + b_g[None, :, None]
    return a * jax.nn.sigmoid(g)


if __name__ == "__main__":
    # Small shapes consistent with Conv1d: batch=2, in_ch=4, out_ch=4, T=16
    N, C_in, C_out, T = 2, 4, 4, 16
    K, dilation = 3, 2

    key = jax.random.PRNGKey(0)
    kx, kwf, kbf, kwg, kbg = jax.random.split(key, 5)
    x = jax.random.normal(kx, (N, C_in, T), dtype=jnp.float32)
    bound = 1.0 / (C_in * K) ** 0.5
    w_f = jax.random.uniform(kwf, (C_out, C_in, K), minval=-bound, maxval=bound)
    b_f = jax.random.uniform(kbf, (C_out,), minval=-bound, maxval=bound)
    w_g = jax.random.uniform(kwg, (C_out, C_in, K), minval=-bound, maxval=bound)
    b_g = jax.random.uniform(kbg, (C_out,), minval=-bound, maxval=bound)

    ref = _reference(x, w_f, b_f, w_g, b_g, kernel_size=K, dilation=dilation)

    # Single-time-tile path (default tile size).
    out = gated_conv1d(x, w_f, b_f, w_g, b_g, kernel_size=K, dilation=dilation)
    out = jax.block_until_ready(out)
    assert out.shape == (N, C_out, T)
    assert jnp.allclose(out, ref, atol=1e-5, rtol=1e-5)

    # Multi-time-tile path (exercises the carried causal halo across tiles).
    out2 = gated_conv1d(x, w_f, b_f, w_g, b_g, kernel_size=K,
                        dilation=dilation, time_tile=8)
    out2 = jax.block_until_ready(out2)
    assert jnp.allclose(out2, ref, atol=1e-5, rtol=1e-5)

    print("KERNEL_OK")
</pallas_src>

<mosaic_0001>
module attributes {stable_mosaic.version = 11 : i64} {
  func.func @_gated_conv1d_kernel(%arg0: i32, %arg1: i32, %arg2: memref<1x16x128xf32, #tpu.memory_space<vmem>>, %arg3: memref<3x128x256xf32, #tpu.memory_space<vmem>>, %arg4: memref<1x256xf32, #tpu.memory_space<vmem>>, %arg5: memref<1x16x128xf32, #tpu.memory_space<vmem>>, %arg6: memref<24x128xf32, #tpu.memory_space<vmem>>) attributes {dimension_semantics = [#tpu.dimension_semantics<parallel>, #tpu.dimension_semantics<arbitrary>], iteration_bounds = array<i64: 2, 1>, scalar_prefetch = 0 : i64, scratch_operands = 1 : i64, tpu.core_type = #tpu.core_type<tc>, window_params = [{transform_indices = @transform_0, window_bounds = array<i64: 1, 16, 128>}, {pipeline_mode = #tpu.pipeline_mode<synchronous>, transform_indices = @transform_1, window_bounds = array<i64: 3, 128, 256>}, {pipeline_mode = #tpu.pipeline_mode<synchronous>, transform_indices = @transform_2, window_bounds = array<i64: 1, 256>}, {transform_indices = @transform_3, window_bounds = array<i64: 1, 16, 128>}]} {
    %c0_i32 = arith.constant 0 : i32
    %0 = arith.cmpi eq, %arg1, %c0_i32 : i32
    %1 = arith.extui %0 : i1 to i32
    %c0_i32_0 = arith.constant 0 : i32
    %2 = arith.cmpi ne, %1, %c0_i32_0 : i32
    scf.if %2 {
      %cst_25 = arith.constant 0.000000e+00 : f32
      %38 = vector.broadcast %cst_25 : f32 to vector<8x128xf32>
      %c0_26 = arith.constant 0 : index
      %c0_27 = arith.constant 0 : index
      %39 = vector.load %arg6[%c0_26, %c0_27] : memref<24x128xf32, #tpu.memory_space<vmem>>, vector<8x128xf32>
      tpu.vector_store %arg6[%c0_26, %c0_27], %38 {strides = array<i32>} : memref<24x128xf32, #tpu.memory_space<vmem>>, vector<8x128xf32>,
    } else {
    }
    %c0 = arith.constant 0 : index
    %c0_1 = arith.constant 0 : index
    %c0_2 = arith.constant 0 : index
    %3 = vector.load %arg2[%c0, %c0_1, %c0_2] : memref<1x16x128xf32, #tpu.memory_space<vmem>>, vector<1x16x128xf32>
    %4 = vector.shape_cast %3 : vector<1x16x128xf32> to vector<16x128xf32>
    %c8 = arith.constant 8 : index
    %c0_3 = arith.constant 0 : index
    %5 = vector.load %arg6[%c8, %c0_3] : memref<24x128xf32, #tpu.memory_space<vmem>>, vector<16x128xf32>
    tpu.vector_store %arg6[%c8, %c0_3], %4 {strides = array<i32>} : memref<24x128xf32, #tpu.memory_space<vmem>>, vector<16x128xf32>,
    %c4 = arith.constant 4 : index
    %c0_4 = arith.constant 0 : index
    %6 = vector.load %arg6[%c4, %c0_4] : memref<24x128xf32, #tpu.memory_space<vmem>>, vector<16x128xf32>
    %c0_5 = arith.constant 0 : index
    %c0_6 = arith.constant 0 : index
    %c0_7 = arith.constant 0 : index
    %7 = vector.load %arg3[%c0_5, %c0_6, %c0_7] : memref<3x128x256xf32, #tpu.memory_space<vmem>>, vector<1x128x256xf32>
    %8 = vector.shape_cast %7 : vector<1x128x256xf32> to vector<128x256xf32>
    %cst = arith.constant dense<0.000000e+00> : vector<16x256xf32>
    %9 = tpu.matmul %6, %8, %cst {dimension_numbers = #tpu.dot_dimension_numbers<[1], [0], [0], [1], [0, 0, 1, 1], [], []>} : vector<16x128xf32>, vector<128x256xf32>, vector<16x256xf32> -> vector<16x256xf32>
    %c6 = arith.constant 6 : index
    %c0_8 = arith.constant 0 : index
    %10 = vector.load %arg6[%c6, %c0_8] : memref<24x128xf32, #tpu.memory_space<vmem>>, vector<16x128xf32>
    %c1 = arith.constant 1 : index
    %c0_9 = arith.constant 0 : index
    %c0_10 = arith.constant 0 : index
    %11 = vector.load %arg3[%c1, %c0_9, %c0_10] : memref<3x128x256xf32, #tpu.memory_space<vmem>>, vector<1x128x256xf32>
    %12 = vector.shape_cast %11 : vector<1x128x256xf32> to vector<128x256xf32>
    %cst_11 = arith.constant dense<0.000000e+00> : vector<16x256xf32>
    %13 = tpu.matmul %10, %12, %cst_11 {dimension_numbers = #tpu.dot_dimension_numbers<[1], [0], [0], [1], [0, 0, 1, 1], [], []>} : vector<16x128xf32>, vector<128x256xf32>, vector<16x256xf32> -> vector<16x256xf32>
    %14 = arith.addf %9, %13 : vector<16x256xf32>
    %c8_12 = arith.constant 8 : index
    %c0_13 = arith.constant 0 : index
    %15 = vector.load %arg6[%c8_12, %c0_13] : memref<24x128xf32, #tpu.memory_space<vmem>>, vector<16x128xf32>
    %c2 = arith.constant 2 : index
    %c0_14 = arith.constant 0 : index
    %c0_15 = arith.constant 0 : index
    %16 = vector.load %arg3[%c2, %c0_14, %c0_15] : memref<3x128x256xf32, #tpu.memory_space<vmem>>, vector<1x128x256xf32>
    %17 = vector.shape_cast %16 : vector<1x128x256xf32> to vector<128x256xf32>
    %cst_16 = arith.constant dense<0.000000e+00> : vector<16x256xf32>
    %18 = tpu.matmul %15, %17, %cst_16 {dimension_numbers = #tpu.dot_dimension_numbers<[1], [0], [0], [1], [0, 0, 1, 1], [], []>} : vector<16x128xf32>, vector<128x256xf32>, vector<16x256xf32> -> vector<16x256xf32>
    %19 = arith.addf %14, %18 : vector<16x256xf32>
    %c0_17 = arith.constant 0 : index
    %c0_18 = arith.constant 0 : index
    %20 = vector.load %arg4[%c0_17, %c0_18] : memref<1x256xf32, #tpu.memory_space<vmem>>, vector<1x256xf32>
    %21 = vector.broadcast %20 : vector<1x256xf32> to vector<16x256xf32>
    %22 = arith.addf %19, %21 : vector<16x256xf32>
    %23 = vector.extract_strided_slice %22 {offsets = [0, 0], sizes = [16, 128], strides = [1, 1]} : vector<16x256xf32> to vector<16x128xf32>
    %24 = vector.extract_strided_slice %22 {offsets = [0, 128], sizes = [16, 128], strides = [1, 1]} : vector<16x256xf32> to vector<16x128xf32>
    %25 = arith.negf %24 : vector<16x128xf32>
    %26 = math.exp %25 : vector<16x128xf32>
    %cst_19 = arith.constant 1.000000e+00 : f32
    %27 = vector.broadcast %cst_19 : f32 to vector<16x128xf32>
    %28 = arith.addf %27, %26 : vector<16x128xf32>
    %29 = arith.divf %27, %28 : vector<16x128xf32>
    %30 = arith.mulf %23, %29 : vector<16x128xf32>
    %c0_20 = arith.constant 0 : index
    %c0_21 = arith.constant 0 : index
    %c0_22 = arith.constant 0 : index
    %31 = vector.load %arg5[%c0_20, %c0_21, %c0_22] : memref<1x16x128xf32, #tpu.memory_space<vmem>>, vector<1x16x128xf32>
    %32 = vector.shape_cast %31 : vector<1x16x128xf32> to vector<16x128xf32>
    %33 = vector.shape_cast %30 : vector<16x128xf32> to vector<1x16x128xf32>
    tpu.vector_store %arg5[%c0_20, %c0_21, %c0_22], %33 {strides = array<i32>} : memref<1x16x128xf32, #tpu.memory_space<vmem>>, vector<1x16x128xf32>,
    %c1_i32 = arith.constant 1 : i32
    %34 = arith.addi %arg1, %c1_i32 : i32
    %c1_i32_23 = arith.constant 1 : i32
    %35 = arith.cmpi slt, %34, %c1_i32_23 : i32
    %36 = arith.extui %35 : i1 to i32
    %c0_i32_24 = arith.constant 0 : i32
    %37 = arith.cmpi ne, %36, %c0_i32_24 : i32
    scf.if %37 {
      %c16 = arith.constant 16 : index
      %c0_25 = arith.constant 0 : index
      %38 = vector.load %arg6[%c16, %c0_25] : memref<24x128xf32, #tpu.memory_space<vmem>>, vector<8x128xf32>
      %c0_26 = arith.constant 0 : index
      %c0_27 = arith.constant 0 : index
      %39 = vector.load %arg6[%c0_26, %c0_27] : memref<24x128xf32, #tpu.memory_space<vmem>>, vector<8x128xf32>
      tpu.vector_store %arg6[%c0_26, %c0_27], %38 {strides = array<i32>} : memref<24x128xf32, #tpu.memory_space<vmem>>, vector<8x128xf32>,
    } else {
    }
    return
  }
  func.func @transform_0(%arg0: i32, %arg1: i32) -> (i32, i32, i32) {
    %c0_i32 = arith.constant 0 : i32
    %c0_i32_0 = arith.constant 0 : i32
    return %arg0, %arg1, %c0_i32 : i32, i32, i32
  }
  func.func @transform_1(%arg0: i32, %arg1: i32) -> (i32, i32, i32) {
    %c0_i32 = arith.constant 0 : i32
    %c0_i32_0 = arith.constant 0 : i32
    %c0_i32_1 = arith.constant 0 : i32
    %c0_i32_2 = arith.constant 0 : i32
    return %c0_i32, %c0_i32_0, %c0_i32_1 : i32, i32, i32
  }
  func.func @transform_2(%arg0: i32, %arg1: i32) -> (i32, i32) {
    %c0_i32 = arith.constant 0 : i32
    %c0_i32_0 = arith.constant 0 : i32
    %c0_i32_1 = arith.constant 0 : i32
    return %c0_i32, %c0_i32_0 : i32, i32
  }
  func.func @transform_3(%arg0: i32, %arg1: i32) -> (i32, i32, i32) {
    %c0_i32 = arith.constant 0 : i32
    %c0_i32_0 = arith.constant 0 : i32
    return %arg0, %arg1, %c0_i32 : i32, i32, i32
  }
}

</mosaic_0001>

<bundles_post_ra>
// kernel: tpu_custom_call.1
= control target key start
LH: loop header
LB: loop body
LE: loop exit
PB: predicated region body
PF: predicated region fallthrough
CT: control target
= control target key end

     0   :  { %8 = vsyncpa [#allocation4], 0  ;;  %s1374_s0 = inlined_call_operand.hbm [shape: f32[2,16,128], index: 0, kind: input, shape index: {}]   ;;  %s1375_s1 = inlined_call_operand.hbm [shape: f32[3,128,256], index: 1, kind: input, shape index: {}]   ;;  %s1376_s2 = inlined_call_operand.vmem [shape: f32[1,256], index: 2, kind: input, shape index: {}]   ;;  %s1377_s3 = inlined_call_operand.hbm [shape: f32[2,16,128], index: 3, kind: output, shape index: {}]  }
   0x1   :  { %10 = vsyncpa [#allocation4 + $0x1], 0 }
   0x2   :  { %11 = vsyncpa [#allocation7], 0 }
   0x3   :  { %12 = vsyncpa [#allocation5], 0 }
   0x4   :  { %14 = vsyncpa [#allocation5 + $0x1], 0  ;;  %s1129_s12 = smov 0   ;;  %s1131_s13 = smov 0  }
   0x5   :  { %s1133_s14 = smov 0   ;;  %s1135_s15 = smov 0  }
   0x6   :  { %s1137_s16 = smov 0   ;;  %s1139_s17 = smov 0  }
   0x7 LB: > { %s724_s18 = sadd.s32 4294967295, %s1097_s17   ;;  %s725_s19 = sadd.s32 4294967294, %s1097_s17   ;;  %s1097_s17 = sphi %s1139_s17, %s20_s17   ;;  %s1093_s16 = sphi %s1137_s16, %s1401_s16   ;;  %s1089_s15 = sphi %s1135_s15, %s1400_s15   ;;  %s1085_s14 = sphi %s1133_s14, %s1399_s14   ;;  %s1081_s13 = sphi %s1131_s13, %s1398_s13   ;;  %s1077_s12 = sphi %s1129_s12, %s1397_s12  }
   0x8   : > { %p54_p0 = scmp.ne.s32.totalorder %s1081_s13, %s1077_s12  ;;  %p1163_p1 = scmp.eq.s32.totalorder %s724_s18, 0 }
   0x9   : > { %p1167_p2 = scmp.eq.s32.totalorder %s724_s18, 1  ;;  %p128_p3 = scmp.eq.s32.totalorder %s725_s19, 1 }
   0xa   : > { %s1382_s20 = scalar_select %p1163_p1, 1, 0 }
   0xb   : > { %s1383_s21 = scalar_select %p1167_p2, 1, 0 }
   0xc   : > { %p1173_p4 = por %p1163_p1, %p54_p0  ;;  %p726_p5 = scmp.ge.s32.totalorder %s1097_s17, 1 }
   0xd   : > { %p1178_p6 = por %p128_p3, %p54_p0  ;;  %p135_p7 = scmp.lt.s32.totalorder %s1097_s17, 3 }
   0xe   : > { %s1384_s22 = scalar_select %p1173_p4, 1, 0 }
   0xf   : > { %s1385_s23 = scalar_select %p1178_p6, 1, 0 }
  0x10   : > { %p1183_p8 = pnand %p726_p5, %p135_p7  ;;  %s1099_s25 = smov [#allocation6]  }
  0x11   : > { %s147_s26 = sshll.u32 %s1099_s25, 4  ;;  %s32_s28 = sadd.s32 1, %s1093_s16  ;;  %s148_s26 = int_to_ptr.vmem [resolvable:$true] %s147_s26 }
  0x12   : > { %s1386_s24 = scalar_select %p1183_p8, 1, 0 }
  0x13   : > { %p873_p9 = pneg %p1183_p8  ;;  %s953_s4 = scalar_lea.hbm %s1375_s1, 12288 }
  0x14   : > { %p954_p12 = scmp.ne.s32.totalorder %s1375_s1, %s953_s4  ;;  %p960_p5 = scmp.lt.u32.totalorder %s953_s4, %s1375_s1 }
  0x15   : > { %p1192_p11 = pnand %p873_p9, %p1163_p1 }
  0x17   : > { %p955_p13 = pneg %p1192_p11 }
  0x19   : > { %p956_p0 = pnand %p955_p13, %p954_p12 }
  0x1b   : > { %p957_p3 = pneg %p956_p0 }
  0x1d   : > { %p962_p7 = pnand %p960_p5, %p957_p3 }
  0x1f   : > { %965 = shalt.err (!%p962_p7)
}
  0x20   : > { %s966_s9 = scalar_lea.vmem %s148_s26, 12288  ;;  %p974_p1 = scmp.lt.s32.totalorder %s148_s26, %s148_s26 }
  0x21   : > { %p967_p9 = scmp.ne.s32.totalorder %s148_s26, %s966_s9  ;;  %p975_p4 = scmp.lt.s32.totalorder %s966_s9, %s966_s9 }
  0x23   : > { %p969_p10 = pnand %p967_p9, %p955_p13  ;;  %p976_p8 = por %p975_p4, %p974_p1 }
  0x25   : > { %p970_p6 = pneg %p969_p10 }
  0x27   : > { %p977_p2 = pnand %p976_p8, %p970_p6 }
  0x29   : > { %980 = shalt.err (!%p977_p2)
}
  0x2a   : > { %s1100_s10 = smov 256   ;;  %s1101_s11 = smov 16  }
  0x2b   : > { %876 = dma.hbm_to_vmem [thread:$0]  (!%p1192_p11), %s1375_s1, 12288, %s148_s26, [#allocation7], %s1100_s10, %s1100_s10, %s1101_s11  }
  0x2c   : > { %p34_p1 = scmp.ge.s32.totalorder %s32_s28, 2  ;;  %s41_s25 = sadd.s32 1, %s1085_s14 }
  0x2d   : > { %p48_p2 = scmp.ne.s32.totalorder %s1085_s14, %s1081_s13  ;;  %p49_p4 = scmp.eq.s32.totalorder %s1097_s17, 0 }
  0x2e   : > { %s1403_s28 = smov (%p34_p1, %s32_s28), 0  ;;  %p1389_p8 = scmp.ne.s32.totalorder %s1383_s21, 0 }
  0x2f   : > { %p1219_p6 = por %p49_p4, %p48_p2  ;;  %s36_s27 = ssub.s32 %s1093_s16, %s1403_s28 }
  0x30   : > { %p1225_p10 = por %p1389_p8, %p48_p2  ;;  %p886_p12 = scmp.lt.s32.totalorder %s1097_s17, 2 }
  0x31   : > { %p39_p11 = scmp.eq.s32.totalorder %s36_s27, 0  ;;  %s164_s26 = sand.u32 1, %s1085_s14  }
  0x32   : > { %s729_s4 = sshll.u32 %s164_s26, 4  ;;  %s743_s6 = sshll.u32 %s1093_s16, 8 }
  0x33   : > { %s1234_s5 = scalar_select %p39_p11, %s1085_s14, %s41_s25  }
  0x34   : > { %s1240_s9 = scalar_lea.hbm %s1374_s0, %s743_s6  ;;  %s168_s21 = scalar_lea.vmem [#allocation3], %s729_s4 }
  0x35   : > { %s177_s10 = sshll.u32 %s168_s21, 4  ;;  %p1246_p13 = pnand %p886_p12, %p1219_p6  ;;  %s1242_s10 = int_to_ptr.vmem [resolvable:$true] %s177_s10 }
  0x36   : > { %s1250_s18 = scalar_lea.sflag [#allocation4], %s164_s26  ;;  %s981_s19 = scalar_lea.hbm %s1240_s9, 256 }
  0x37   : > { %p982_p0 = scmp.ne.s32.totalorder %s1240_s9, %s981_s19  ;;  %p983_p3 = pneg %p1246_p13 }
  0x38   : > { %s986_s29 = scalar_lea.hbm %s1374_s0, 512  ;;  %p987_p9 = scmp.lt.u32.totalorder %s1240_s9, %s1374_s0 }
  0x39   : > { %p984_p5 = pnand %p983_p3, %p982_p0  ;;  %p988_p1 = scmp.lt.u32.totalorder %s986_s29, %s981_s19 }
  0x3a   : > { %p990_p4 = scmp.lt.u32.totalorder %s981_s19, %s1240_s9 }
  0x3b   : > { %p985_p7 = pneg %p984_p5  ;;  %p989_p2 = por %p988_p1, %p987_p9 }
  0x3d   : > { %p991_p6 = por %p990_p4, %p989_p2 }
  0x3f   : > { %p992_p8 = pnand %p991_p6, %p985_p7 }
  0x41   : > { %995 = shalt.err (!%p992_p8)
}
  0x42   : > { %s996_s26 = scalar_lea.vmem %s1242_s10, 256  ;;  %s1102_s7 = smov [#allocation3]  }
  0x43   : > { %p997_p12 = scmp.ne.s32.totalorder %s1242_s10, %s996_s26  ;;  %s1001_s8 = sshll.u32 %s1102_s7, 4  ;;  %s1002_s8 = int_to_ptr.vmem [resolvable:$false] %s1001_s8 }
  0x44   : > { %s1003_s21 = scalar_lea.vmem %s1002_s8, 512  ;;  %p1004_p5 = scmp.lt.s32.totalorder %s1242_s10, %s1002_s8 }
  0x45   : > { %p999_p11 = pnand %p997_p12, %p983_p3  ;;  %p1005_p9 = scmp.lt.s32.totalorder %s1003_s21, %s996_s26 }
  0x47   : > { %p1000_p0 = pneg %p999_p11  ;;  %p1006_p1 = por %p1005_p9, %p1004_p5 }
  0x49   : > { %p1007_p2 = pnand %p1006_p1, %p1000_p0 }
  0x4b   : > { %1010 = shalt.err (!%p1007_p2)
}
  0x4c   : > { %s1103_s19 = smov 128   ;;  %s1104_s25 = smov 8  }
  0x4d   : > { %880 = dma.hbm_to_vmem [thread:$0]  (!%p1246_p13), %s1240_s9, 256, %s1242_s10, %s1250_s18, %s1103_s19, %s1103_s19, %s1104_s25  }
  0x4e   : > { %p1392_p3 = scmp.ne.s32.totalorder %s1386_s24, 0 }
  0x4f   : > { %s1281_s27 = sand.u32 (!%p1392_p3), 1, %s1081_s13   ;;  %p1393_p7 = scmp.ne.s32.totalorder (!%p1392_p3), %s1384_s22, 0 }
  0x50   : > { %189 = sbr.rel (%p1392_p3) target bundleno = 420 (0x1a4), region = 32  ;;  %s733_s29 = sshll.u32 (!%p1392_p3), %s1281_s27, 4 }
  0x51   : > { %s192_s4 = scalar_lea.sflag (!%p1392_p3), [#allocation4], %s1281_s27  ;;  %s1287_s6 = scalar_lea.vmem (!%p1392_p3), [#allocation3], %s733_s29 }
  0x57   : > { %1064 = dma.done.wait (%p1393_p7), %s192_s4, 256  }
  0x58   : > { %1066 = vsyncadd (%p1393_p7), %s192_s4, 4294967040  ;;  %p1394_p13 = scmp.ne.s32.totalorder %s1382_s20, 0 }
  0x5a   : > { %1068 = dma.done.wait (%p1394_p13), [#allocation7], 12288  }
  0x5b   : > { %1070 = vsyncadd (%p1394_p13), [#allocation7], 4294955008  ;;  %v1105_v0 = vmov 0.0   ;;  %v271_v1 = vld [vmem:[#allocation6 + $0x108] sm:$0xff]  ;;  %v273_v2 = vld [vmem:[#allocation6 + $0x118] sm:$0xff]  ;;  %s744_s24 = sshll.u32 %s1089_s15, 8 }
  0x5c   : > { %228 = vst [vmem:[#allocation2] sm:$0xff] %v1105_v0  ;;  %366 = vmatprep.mubr.f32.mxu1 %v1105_v0  ;;  %443 = vmatprep.mubr.f32.mxu0 %v1105_v0  ;;  %v236_v3 = vld [vmem:[#allocation6 + $0x8] sm:$0xff]  ;;  %v745_v4 = vpack.c.bf16 %v273_v2, %v271_v1  ;;  %v238_v5 = vld [vmem:[#allocation6 + $0x18] sm:$0xff]  ;;  %v270_v6 = vld [vmem:[#allocation6 + $0x100] sm:$0xff]  ;;  %s221_s9 = scalar_lea.vmem [#allocation8], %s733_s29  ;;  %s1323_s26 = scalar_lea.hbm %s1377_s3, %s744_s24 }
  0x5d   : > { %v272_v7 = vld [vmem:[#allocation6 + $0x110] sm:$0xff]  ;;  %v777_v8 = vpack.c.bf16 %v238_v5, %v236_v3  ;;  %v235_v10 = vld [vmem:[#allocation6] sm:$0xff]  ;;  %v275_v12 = vld [vmem:[#allocation6 + $0x128] sm:$0xff]  ;;  %s627_s10 = sshll.u32 %s221_s9, 4  ;;  %s612_s15 = scalar_lea.sflag [#allocation5], %s1281_s27  ;;  %s1325_s10 = int_to_ptr.vmem [resolvable:$true] %s627_s10 }
  0x5e   : > { %v747_v9 = vpack.c.bf16 %v272_v7, %v270_v6  ;;  %v237_v11 = vld [vmem:[#allocation6 + $0x10] sm:$0xff]  ;;  %746 = vmatprep.subr.bf16.mxu1 %v745_v4  ;;  %v277_v14 = vld [vmem:[#allocation6 + $0x138] sm:$0xff]  ;;  %v240_v15 = vld [vmem:[#allocation6 + $0x28] sm:$0xff]  ;;  %s1011_s7 = scalar_lea.vmem %s1325_s10, 256  ;;  %s1106_s8 = smov [#allocation8]  }
  0x5f   : > { %v779_v13 = vpack.c.bf16 %v237_v11, %v235_v10  ;;  %v242_v16 = vld [vmem:[#allocation6 + $0x38] sm:$0xff]  ;;  %778 = vmatprep.subr.bf16.mxu0 %v777_v8  ;;  %v749_v17 = vpack.c.bf16 %v277_v14, %v275_v12  ;;  %v274_v19 = vld [vmem:[#allocation6 + $0x120] sm:$0xff]  ;;  %v276_v20 = vld [vmem:[#allocation6 + $0x130] sm:$0xff]  ;;  %p1012_p4 = scmp.ne.s32.totalorder %s1325_s10, %s1011_s7  ;;  %s1015_s21 = sshll.u32 %s1106_s8, 4  ;;  %s1016_s21 = int_to_ptr.vmem [resolvable:$false] %s1015_s21 }
  0x60   : > { %748 = vmatpush1.bf16.msra.mxu1 %v747_v9  ;;  %v781_v18 = vpack.c.bf16 %v242_v16, %v240_v15  ;;  %v239_v21 = vld [vmem:[#allocation6 + $0x20] sm:$0xff]  ;;  %v751_v22 = vpack.c.bf16 %v276_v20, %v274_v19  ;;  %v241_v23 = vld [vmem:[#allocation6 + $0x30] sm:$0xff]  ;;  %v279_v24 = vld [vmem:[#allocation6 + $0x148] sm:$0xff]  ;;  %s1017_s19 = scalar_lea.vmem %s1016_s21, 512  ;;  %p1018_p12 = scmp.lt.s32.totalorder %s1325_s10, %s1016_s21 }
  0x61   : > { %780 = vmatpush1.bf16.msra.mxu0 %v779_v13  ;;  %v281_v25 = vld [vmem:[#allocation6 + $0x158] sm:$0xff]  ;;  %750 = vmatprep.subr.bf16.mxu1 %v749_v17  ;;  %v783_v26 = vpack.c.bf16 %v241_v23, %v239_v21  ;;  %v244_v28 = vld [vmem:[#allocation6 + $0x48] sm:$0xff]  ;;  %v278_v30 = vld [vmem:[#allocation6 + $0x140] sm:$0xff]  ;;  %p1013_p6 = pnand %p1012_p4, %p1225_p10  ;;  %p1019_p11 = scmp.lt.s32.totalorder %s1017_s19, %s1011_s7 }
  0x62   : > { %782 = vmatprep.subr.bf16.mxu0 %v781_v18  ;;  %v753_v27 = vpack.c.bf16 %v281_v25, %v279_v24  ;;  %v246_v29 = vld [vmem:[#allocation6 + $0x58] sm:$0xff]  ;;  %v280_v32 = vld [vmem:[#allocation6 + $0x150] sm:$0xff]  ;;  %v243_v33 = vld [vmem:[#allocation6 + $0x40] sm:$0xff] }
  0x63   : > { %v785_v31 = vpack.c.bf16 %v246_v29, %v244_v28  ;;  %v245_v34 = vld [vmem:[#allocation6 + $0x50] sm:$0xff]  ;;  %v755_v35 = vpack.c.bf16 %v280_v32, %v278_v30  ;;  %v283_v36 = vld [vmem:[#allocation6 + $0x168] sm:$0xff]  ;;  %v285_v37 = vld [vmem:[#allocation6 + $0x178] sm:$0xff]  ;;  %p1014_p8 = pneg %p1013_p6  ;;  %p1020_p0 = por %p1019_p11, %p1018_p12 }
  0x64   : > { %752 = vmatpush1.bf16.msra.mxu1 %v751_v22  ;;  %v248_v38 = vld [vmem:[#allocation6 + $0x68] sm:$0xff]  ;;  %v787_v39 = vpack.c.bf16 %v245_v34, %v243_v33  ;;  %v757_v40 = vpack.c.bf16 %v285_v37, %v283_v36  ;;  %v250_v41 = vld [vmem:[#allocation6 + $0x78] sm:$0xff]  ;;  %v282_v42 = vld [vmem:[#allocation6 + $0x160] sm:$0xff] }
  0x65   : > { %784 = vmatpush1.bf16.msra.mxu0 %v783_v26  ;;  %754 = vmatprep.subr.bf16.mxu1 %v753_v27  ;;  %v284_v43 = vld [vmem:[#allocation6 + $0x170] sm:$0xff]  ;;  %v789_v44 = vpack.c.bf16 %v250_v41, %v248_v38  ;;  %v247_v45 = vld [vmem:[#allocation6 + $0x60] sm:$0xff]  ;;  %v287_v47 = vld [vmem:[#allocation6 + $0x188] sm:$0xff]  ;;  %p1021_p5 = pnand %p1020_p0, %p1014_p8 }
  0x66   : > { %786 = vmatprep.subr.bf16.mxu0 %v785_v31  ;;  %v249_v46 = vld [vmem:[#allocation6 + $0x70] sm:$0xff]  ;;  %v289_v48 = vld [vmem:[#allocation6 + $0x198] sm:$0xff]  ;;  %v252_v49 = vld [vmem:[#allocation6 + $0x88] sm:$0xff]  ;;  %v759_v51 = vpack.c.bf16 %v284_v43, %v282_v42 }
  0x67   : > { %v254_v50 = vld [vmem:[#allocation6 + $0x98] sm:$0xff]  ;;  %v791_v52 = vpack.c.bf16 %v249_v46, %v247_v45  ;;  %v761_v53 = vpack.c.bf16 %v289_v48, %v287_v47  ;;  %v286_v54 = vld [vmem:[#allocation6 + $0x180] sm:$0xff]  ;;  %v288_v55 = vld [vmem:[#allocation6 + $0x190] sm:$0xff] }
  0x68   : > { %756 = vmatpush1.bf16.msra.mxu1 %v755_v35  ;;  %v251_v56 = vld [vmem:[#allocation6 + $0x80] sm:$0xff]  ;;  %v793_v57 = vpack.c.bf16 %v254_v50, %v252_v49  ;;  %v253_v58 = vld [vmem:[#allocation6 + $0x90] sm:$0xff]  ;;  %v291_v59 = vld [vmem:[#allocation6 + $0x1a8] sm:$0xff]  ;;  %v763_v63 = vpack.c.bf16 %v288_v55, %v286_v54 }
  0x69   : > { %788 = vmatpush1.bf16.msra.mxu0 %v787_v39  ;;  %758 = vmatprep.subr.bf16.mxu1 %v757_v40  ;;  %v293_v60 = vld [vmem:[#allocation6 + $0x1b8] sm:$0xff]  ;;  %v256_v61 = vld [vmem:[#allocation6 + $0xa8] sm:$0xff]  ;;  %v795_v1 = vpack.c.bf16 %v253_v58, %v251_v56  ;;  %v290_v3 = vld [vmem:[#allocation6 + $0x1a0] sm:$0xff] }
  0x6a   : > { %790 = vmatprep.subr.bf16.mxu0 %v789_v44  ;;  %v258_v62 = vld [vmem:[#allocation6 + $0xb8] sm:$0xff]  ;;  %v765_v2 = vpack.c.bf16 %v293_v60, %v291_v59  ;;  %v292_v4 = vld [vmem:[#allocation6 + $0x1b0] sm:$0xff]  ;;  %v255_v5 = vld [vmem:[#allocation6 + $0xa0] sm:$0xff] }
  0x6b   : > { %v797_v6 = vpack.c.bf16 %v258_v62, %v256_v61  ;;  %v257_v7 = vld [vmem:[#allocation6 + $0xb0] sm:$0xff]  ;;  %v295_v8 = vld [vmem:[#allocation6 + $0x1c8] sm:$0xff]  ;;  %v297_v9 = vld [vmem:[#allocation6 + $0x1d8] sm:$0xff]  ;;  %v767_v12 = vpack.c.bf16 %v292_v4, %v290_v3 }
  0x6c   : > { %760 = vmatpush1.bf16.msra.mxu1 %v759_v51  ;;  %v260_v10 = vld [vmem:[#allocation6 + $0xc8] sm:$0xff]  ;;  %v262_v11 = vld [vmem:[#allocation6 + $0xd8] sm:$0xff]  ;;  %v294_v13 = vld [vmem:[#allocation6 + $0x1c0] sm:$0xff]  ;;  %v799_v14 = vpack.c.bf16 %v257_v7, %v255_v5  ;;  %v769_v15 = vpack.c.bf16 %v297_v9, %v295_v8 }
  0x6d   : > { %792 = vmatpush1.bf16.msra.mxu0 %v791_v52  ;;  %762 = vmatprep.subr.bf16.mxu1 %v761_v53  ;;  %v296_v16 = vld [vmem:[#allocation6 + $0x1d0] sm:$0xff]  ;;  %v259_v17 = vld [vmem:[#allocation6 + $0xc0] sm:$0xff]  ;;  %v801_v19 = vpack.c.bf16 %v262_v11, %v260_v10  ;;  %v299_v21 = vld [vmem:[#allocation6 + $0x1e8] sm:$0xff] }
  0x6e   : > { %794 = vmatprep.subr.bf16.mxu0 %v793_v57  ;;  %v1301_v18 = vld [vmem:[%s1287_s6] sm:$0xff]  ;;  %v301_v22 = vld [vmem:[#allocation6 + $0x1f8] sm:$0xff]  ;;  %v264_v23 = vld [vmem:[#allocation6 + $0xe8] sm:$0xff]  ;;  %v771_v25 = vpack.c.bf16 %v296_v16, %v294_v13 }
  0x6f   : > { %v261_v20 = vld [vmem:[#allocation6 + $0xd0] sm:$0xff]  ;;  %231 = vst [vmem:[#allocation2 + $0x8] sm:$0xff] %v1301_v18  ;;  %v266_v24 = vld [vmem:[#allocation6 + $0xf8] sm:$0xff]  ;;  %v773_v27 = vpack.c.bf16 %v301_v22, %v299_v21  ;;  %v298_v28 = vld [vmem:[#allocation6 + $0x1e0] sm:$0xff] }
  0x70   : > { %764 = vmatpush1.bf16.msra.mxu1 %v763_v63  ;;  %v803_v26 = vpack.c.bf16 %v261_v20, %v259_v17  ;;  %v300_v29 = vld [vmem:[#allocation6 + $0x1f0] sm:$0xff]  ;;  %v263_v30 = vld [vmem:[#allocation6 + $0xe0] sm:$0xff]  ;;  %v805_v31 = vpack.c.bf16 %v266_v24, %v264_v23  ;;  %v460_v33 = vld [vmem:[#allocation6 + $0x208] sm:$0xff] }
  0x71   : > { %796 = vmatpush1.bf16.msra.mxu0 %v795_v1  ;;  %766 = vmatprep.subr.bf16.mxu1 %v765_v2  ;;  %v265_v32 = vld [vmem:[#allocation6 + $0xf0] sm:$0xff]  ;;  %v462_v34 = vld [vmem:[#allocation6 + $0x218] sm:$0xff]  ;;  %v775_v35 = vpack.c.bf16 %v300_v29, %v298_v28  ;;  %v459_v38 = vld [vmem:[#allocation6 + $0x200] sm:$0xff] }
  0x72   : > { %798 = vmatprep.subr.bf16.mxu0 %v797_v6  ;;  %v807_v36 = vpack.c.bf16 %v265_v32, %v263_v30  ;;  %v809_v37 = vpack.c.bf16 %v462_v34, %v460_v33  ;;  %v461_v39 = vld [vmem:[#allocation6 + $0x210] sm:$0xff]  ;;  %v464_v40 = vld [vmem:[#allocation6 + $0x228] sm:$0xff]  ;;  %v466_v41 = vld [vmem:[#allocation6 + $0x238] sm:$0xff]  ;;  %v574_v33 = vlaneseq }
  0x73   : > { %v1305_v42 = vld [vmem:[%s1287_s6 + $0x8] sm:$0xff]  ;;  %v811_v44 = vpack.c.bf16 %v461_v39, %v459_v38  ;;  %v813_v46 = vpack.c.bf16 %v466_v41, %v464_v40  ;;  %v463_v47 = vld [vmem:[#allocation6 + $0x220] sm:$0xff]  ;;  %v465_v48 = vld [vmem:[#allocation6 + $0x230] sm:$0xff] }
  0x74   : > { %768 = vmatpush1.bf16.msra.mxu1 %v767_v12  ;;  %232 = vst [vmem:[#allocation2 + $0x10] sm:$0xff] %v1305_v42  ;;  %v468_v49 = vld [vmem:[#allocation6 + $0x248] sm:$0xff]  ;;  %v470_v50 = vld [vmem:[#allocation6 + $0x258] sm:$0xff]  ;;  %v815_v51 = vpack.c.bf16 %v465_v48, %v463_v47  ;;  %v467_v53 = vld [vmem:[#allocation6 + $0x240] sm:$0xff]  ;;  %v575_v34 = vshrl.u32 %v574_v33, 7 }
  0x75   : > { %800 = vmatpush1.bf16.msra.mxu0 %v799_v14  ;;  %770 = vmatprep.subr.bf16.mxu1 %v769_v15  ;;  %v817_v52 = vpack.c.bf16 %v470_v50, %v468_v49  ;;  %v469_v54 = vld [vmem:[#allocation6 + $0x250] sm:$0xff]  ;;  %v472_v55 = vld [vmem:[#allocation6 + $0x268] sm:$0xff]  ;;  %v474_v56 = vld [vmem:[#allocation6 + $0x278] sm:$0xff] }
  0x76   : > { %802 = vmatprep.subr.bf16.mxu0 %v801_v19  ;;  %v267_v43 = vld [vmem:[#allocation2 + $0x6] sm:$0xff]  ;;  %v819_v59 = vpack.c.bf16 %v469_v54, %v467_v53  ;;  %v821_v60 = vpack.c.bf16 %v474_v56, %v472_v55  ;;  %v471_v61 = vld [vmem:[#allocation6 + $0x260] sm:$0xff]  ;;  %v478_v1 = vld [vmem:[#allocation6 + $0x298] sm:$0xff]  ;;  %v576_v53 = vsub.s32 0, %v575_v34 }
  0x77   : > { %v233_v45 = vld [vmem:[#allocation2 + $0x4] sm:$0xff]  ;;  %v475_v4 = vld [vmem:[#allocation6 + $0x280] sm:$0xff]  ;;  %v482_v7 = vld [vmem:[#allocation6 + $0x2b8] sm:$0xff] }
  0x78   : > { %772 = vmatpush1.bf16.msra.mxu1 %v771_v25  ;;  %v473_v62 = vld [vmem:[#allocation6 + $0x270] sm:$0xff]  ;;  %v476_v63 = vld [vmem:[#allocation6 + $0x288] sm:$0xff]  ;;  %v479_v10 = vld [vmem:[#allocation6 + $0x2a0] sm:$0xff] }
  0x79   : > { %804 = vmatpush1.bf16.msra.mxu0 %v803_v26  ;;  %774 = vmatprep.subr.bf16.mxu1 %v773_v27  ;;  %v823_v2 = vpack.c.bf16 %v473_v62, %v471_v61  ;;  %v825_v3 = vpack.c.bf16 %v478_v1, %v476_v63  ;;  %v477_v5 = vld [vmem:[#allocation6 + $0x290] sm:$0xff]  ;;  %v480_v6 = vld [vmem:[#allocation6 + $0x2a8] sm:$0xff]  ;;  %v483_v15 = vld [vmem:[#allocation6 + $0x2c0] sm:$0xff] }
  0x7a   : > { %806 = vmatprep.subr.bf16.mxu0 %v805_v31  ;;  %v827_v8 = vpack.c.bf16 %v477_v5, %v475_v4  ;;  %v829_v9 = vpack.c.bf16 %v482_v7, %v480_v6  ;;  %v481_v11 = vld [vmem:[#allocation6 + $0x2b0] sm:$0xff]  ;;  %v484_v12 = vld [vmem:[#allocation6 + $0x2c8] sm:$0xff]  ;;  %v490_v19 = vld [vmem:[#allocation6 + $0x2f8] sm:$0xff] }
  0x7b   : > { %v268_v57 = vld [vmem:[#allocation2 + $0xe] sm:$0xff]  ;;  %v831_v13 = vpack.c.bf16 %v481_v11, %v479_v10  ;;  %v488_v17 = vld [vmem:[#allocation6 + $0x2e8] sm:$0xff]  ;;  %v487_v22 = vld [vmem:[#allocation6 + $0x2e0] sm:$0xff] }
  0x7c   : > { %776 = vmatpush1.bf16.msra.mxu1 %v775_v35  ;;  %v234_v58 = vld [vmem:[#allocation2 + $0xc] sm:$0xff]  ;;  %v837_v21 = vpack.c.bf16 %v490_v19, %v488_v17  ;;  %v580_v35 = vsub.s32 1, %v575_v34 }
  0x7d   : > { %808 = vmatpush1.bf16.msra.mxu0 %v807_v36  ;;  %841 = vmatprep.subr.bf16.mxu1 %v809_v37  ;;  %v485_v16 = vld [vmem:[#allocation6 + $0x2d0] sm:$0xff]  ;;  %v572_v36 = vld [vmem:[%s1376_s2] sm:$0x3] }
  0x7e   : > { %810 = vmatprep.subr.bf16.mxu0 %v809_v37  ;;  %v835_v20 = vpack.c.bf16 %v485_v16, %v483_v15  ;;  %v489_v23 = vld [vmem:[#allocation6 + $0x2f0] sm:$0xff]  ;;  %v581_v38 = vrot.slane %v572_v36, %v580_v35  ;;  %v577_v54 = vrot.slane %v572_v36, %v576_v53 }
  0x7f   : > { %367 = vmatmul.mubr.f32.vlgmr.msra.gmra.mrb[0].mxu1 %v267_v43  ;;  %v839_v24 = vpack.c.bf16 %v489_v23, %v487_v22 }
  0x80   : > { %444 = vmatmul.mubr.f32.vlgmr.msra.gmra.mrb[0].mxu0 %v233_v45  ;;  %849 = vmatpush1.bf16.msra.mxu1 %v811_v44 }
  0x81   : > { %812 = vmatpush1.bf16.msra.mxu0 %v811_v44  ;;  %842 = vmatprep.subr.bf16.mxu1 %v813_v46 }
  0x82   : > { %814 = vmatprep.subr.bf16.mxu0 %v813_v46  ;;  %372 = vmatprep.mubr.f32.mxu1 %v1105_v0 }
  0x83   : > { %449 = vmatprep.mubr.f32.mxu0 %v1105_v0  ;;  %373 = vmatmul.mubr.f32.gmra.mrb[2].mxu1 %v268_v57 }
  0x84   : > { %850 = vmatpush1.bf16.msra.mxu1 %v815_v51  ;;  %450 = vmatmul.mubr.f32.gmra.mrb[2].mxu0 %v234_v58 }
  0x85   : > { %816 = vmatpush1.bf16.msra.mxu0 %v815_v51  ;;  %843 = vmatprep.subr.bf16.mxu1 %v817_v52 }
  0x86   : > { %818 = vmatprep.subr.bf16.mxu0 %v817_v52  ;;  %555 = vmatprep.mubr.f32.mxu0 %v1105_v0 }
  0x87   : > { %561 = vmatprep.mubr.f32.mxu1 %v1105_v0  ;;  %v486_v0 = vld [vmem:[#allocation6 + $0x2d8] sm:$0xff] }
  0x88   : > { %851 = vmatpush1.bf16.msra.mxu1 %v819_v59  ;;  %v833_v14 = vpack.c.bf16 %v486_v0, %v484_v12 }
  0x89   : > { %820 = vmatpush1.bf16.msra.mxu0 %v819_v59  ;;  %844 = vmatprep.subr.bf16.mxu1 %v821_v60 }
  0x8a   : > { %822 = vmatprep.subr.bf16.mxu0 %v821_v60 }
  0x8c   : > { %852 = vmatpush1.bf16.msra.mxu1 %v823_v2 }
  0x8d   : > { %824 = vmatpush1.bf16.msra.mxu0 %v823_v2  ;;  %845 = vmatprep.subr.bf16.mxu1 %v825_v3 }
  0x8e   : > { %826 = vmatprep.subr.bf16.mxu0 %v825_v3 }
  0x90   : > { %853 = vmatpush1.bf16.msra.mxu1 %v827_v8 }
  0x91   : > { %828 = vmatpush1.bf16.msra.mxu0 %v827_v8  ;;  %846 = vmatprep.subr.bf16.mxu1 %v829_v9 }
  0x92   : > { %830 = vmatprep.subr.bf16.mxu0 %v829_v9 }
  0x94   : > { %854 = vmatpush1.bf16.msra.mxu1 %v831_v13 }
  0x95   : > { %832 = vmatpush1.bf16.msra.mxu0 %v831_v13  ;;  %847 = vmatprep.subr.bf16.mxu1 %v833_v14 }
  0x96   : > { %834 = vmatprep.subr.bf16.mxu0 %v833_v14 }
  0x98   : > { %855 = vmatpush1.bf16.msra.mxu1 %v835_v20 }
  0x99   : > { %836 = vmatpush1.bf16.msra.mxu0 %v835_v20  ;;  %848 = vmatprep.subr.bf16.mxu1 %v837_v21 }
  0x9a   : > { %838 = vmatprep.subr.bf16.mxu0 %v837_v21 }
  0x9c   : > { %856 = vmatpush1.bf16.msra.mxu1 %v839_v24 }
  0x9d   : > { %840 = vmatpush1.bf16.msra.mxu0 %v839_v24 }
  0x9f   : > { %562 = vmatmul.mubr.f32.vlgmr.msra.gmra.mrb[4].mxu1 %v1305_v42 }
  0xa0   : > { %556 = vmatmul.mubr.f32.vlgmr.msra.gmra.mrb[0].mxu0 %v1301_v18 }
 0x152   : > { %v368_v25 = vpop.f32.mrb[0].mxu1 }
 0x153   : > { %v370_v26 = vpop.f32.mrb[1].mxu1 }
 0x156   : > { %v374_v29 = vpop.f32.mrb[2].mxu1 }
 0x157   : > { %v451_v27 = vpop.f32.mrb[2].mxu0  ;;  %v376_v31 = vpop.f32.mrb[3].mxu1 }
 0x158   : > { %v453_v28 = vpop.f32.mrb[3].mxu0  ;;  %v452_v30 = vadd.f32 %v451_v27, %v374_v29 }
 0x159   : > { %v454_v32 = vadd.f32 %v453_v28, %v376_v31 }
 0x172   : > { %v563_v37 = vpop.f32.mrb[4].mxu1 }
 0x173   : > { %v557_v39 = vpop.f32.mrb[0].mxu0  ;;  %v570_v40 = vadd.f32 %v563_v37, %v452_v30  ;;  %v565_v18 = vpop.f32.mrb[5].mxu1 }
 0x174   : > { %v857_v41 = vadd.f32 %v557_v39, %v368_v25  ;;  %v559_v42 = vpop.f32.mrb[1].mxu0  ;;  %v571_v43 = vadd.f32 %v565_v18, %v454_v32 }
 0x175   : > { %v858_v44 = vadd.f32 %v559_v42, %v370_v26  ;;  %v586_v55 = vadd.f32 %v577_v54, %v570_v40 }
 0x176   : > { %v587_v45 = vadd.f32 %v581_v38, %v571_v43  ;;  %v584_v57 = vadd.f32 %v857_v41, %v577_v54 }
 0x177   : > { %v585_v46 = vadd.f32 %v858_v44, %v581_v38 }
 0x178   : > { %v737_v47 = vmul.f32 -1.442695, %v587_v45 }
 0x179   : > { %v736_v48 = vmul.f32 -1.442695, %v585_v46 }
 0x17a   : > { %945 = vpow2.f32 %v737_v47 }
 0x17b   : > { %947 = vpow2.f32 %v736_v48 }
 0x184   : > { %v946_v49 = vpop.eup %945 }
 0x185   : > { %v948_v50 = vpop.eup %947  ;;  %v595_v51 = vadd.f32 1.0, %v946_v49 }
 0x186   : > { %v594_v52 = vadd.f32 1.0, %v948_v50 }
 0x187   : > { %949 = vrcp.f32 %v595_v51 }
 0x188   : > { %951 = vrcp.f32 %v594_v52 }
 0x191   : > { %v950_v56 = vpop.eup %949 }
 0x192   : > { %v952_v58 = vpop.eup %951  ;;  %v601_v59 = vmul.f32 %v950_v56, %v586_v55 }
 0x193   : > { %v600_v60 = vmul.f32 %v952_v58, %v584_v57 }
 0x194   : > { %603 = vst [vmem:[%s221_s9 + $0x8] sm:$0xff] %v601_v59 }
 0x195   : > { %602 = vst [vmem:[%s221_s9] sm:$0xff] %v600_v60 }
 0x196   : > { %1024 = shalt.err (!%p1021_p5)
}
 0x197   : > { %s1025_s25 = scalar_lea.hbm %s1323_s26, 256  ;;  %s1029_s6 = scalar_lea.hbm %s1377_s3, 512 }
 0x198   : > { %p1026_p9 = scmp.ne.s32.totalorder %s1323_s26, %s1025_s25  ;;  %p1030_p3 = scmp.lt.u32.totalorder %s1323_s26, %s1377_s3 }
 0x199   : > { %p1031_p7 = scmp.lt.u32.totalorder %s1029_s6, %s1025_s25  ;;  %p1033_p4 = scmp.lt.u32.totalorder %s1025_s25, %s1323_s26 }
 0x19a   : > { %p1027_p1 = pnand %p1026_p9, %p1225_p10 }
 0x19b   : > { %p1032_p13 = por %p1031_p7, %p1030_p3 }
 0x19c   : > { %p1028_p2 = pneg %p1027_p1 }
 0x19d   : > { %p1034_p6 = por %p1033_p4, %p1032_p13 }
 0x19f   : > { %p1035_p8 = pnand %p1034_p6, %p1028_p2 }
 0x1a1   : > { %1038 = shalt.err (!%p1035_p8)
}
 0x1a2   : > { %s1107_s24 = smov 128   ;;  %s1108_s9 = smov 8  }
 0x1a3   : > { %871 = dma.vmem_to_hbm [thread:$0]  (%p1225_p10), %s1325_s10, 256, %s1323_s26, %s612_s15, %s1107_s24, %s1107_s24, %s1108_s9  }
 0x1a4 PF: > { %s642_s11 = sand.u32 1, %s1077_s12   ;;  %p1395_p12 = scmp.ne.s32.totalorder %s1385_s23, 0 }
 0x1a5   : > { %p1396_p11 = scmp.ge.s32.totalorder %s1097_s17, 2  ;;  %s643_s18 = scalar_lea.sflag [#allocation5], %s642_s11 }
 0x1a7   : > { %p882_p0 = pnand %p1396_p11, %p1395_p12 }
 0x1a9   : > { %1072 = dma.done.wait (!%p882_p0), %s643_s18, 256  }
 0x1aa   : > { %1074 = vsyncadd (!%p882_p0), %s643_s18, 4294967040  ;;  %s20_s17 = sadd.s32 1, %s1097_s17   ;;  %s1397_s12 = smov %s1081_s13 }
 0x1ab   : > { %p17_p5 = scmp.ge.s32.totalorder %s20_s17, 4   ;;  %s1398_s13 = smov %s1085_s14 }
 0x1ac   : > { %s1399_s14 = smov %s1234_s5  ;;  %s1400_s15 = smov %s1093_s16 }
 0x1ad   : > { %s1401_s16 = smov %s1403_s28  ;;  %19 = sbr.rel (!%p17_p5) target bundleno = 7 (0x7), region = 91 }
 0x1b4   :  { %648 = vsyncpa [#allocation4], 1 }
 0x1b5   :  { %650 = vsyncpa [#allocation4 + $0x1], 1 }
 0x1b6   :  { %651 = vsyncpa [#allocation7], 1 }
 0x1b7   :  { %652 = vsyncpa [#allocation5], 1 }
 0x1b8   :  { %654 = vsyncpa [#allocation5 + $0x1], 1 }

</bundles_post_ra>
